<compile_context>
chip_gen: v5e
topology: v5e:2x2
jax: 0.10.0
libtpu: 0.0.40
codegen_flags: <defaults>
</compile_context>

<pallas_src>
import math
import numpy as np
import jax
import jax.numpy as jnp
from jax.experimental import pallas as pl
from jax.experimental.pallas import tpu as pltpu


# ----------------------------- glue: Lanczos weights ------------------------
def _lanczos(x, a=3.0):
    x = np.asarray(x, dtype=np.float64)
    core = np.sinc(x) * np.sinc(x / a)
    out = np.where(np.abs(x) < 1e-12, 1.0, core)
    return np.where(np.abs(x) >= a, 0.0, out)


def _resize_weights(in_size: int, out_size: int, a: int = 3) -> np.ndarray:
    """Separable Lanczos resample weight matrix of shape (out_size, in_size)."""
    if in_size == out_size:
        return np.eye(out_size, dtype=np.float32)
    scale = in_size / out_size                 # > 1 means downscale
    filt_scale = max(scale, 1.0)               # widen kernel when downscaling
    support = a * filt_scale
    W = np.zeros((out_size, in_size), dtype=np.float64)
    for i in range(out_size):
        center = (i + 0.5) * scale - 0.5
        lo = int(math.floor(center - support))
        hi = int(math.ceil(center + support))
        idx = np.arange(lo, hi + 1)
        w = _lanczos((idx - center) / filt_scale, a)
        idx_c = np.clip(idx, 0, in_size - 1)   # edge-clamp (replicate border)
        for k, j in enumerate(idx_c):
            W[i, j] += w[k]
        s = W[i].sum()
        if s != 0.0:
            W[i] /= s
    return W.astype(np.float32)


def _prep_weights(W: np.ndarray, cdt) -> np.ndarray:
    """Pre-compensate low-precision quantization so rows still sum to ~1 after
    the cast to compute_dtype (fixes the bf16 intensity-bias concern)."""
    cdt = jnp.dtype(cdt)
    W = W.astype(np.float32)
    if cdt == jnp.dtype(jnp.float32):
        return W
    Wq = np.asarray(jnp.asarray(W, jnp.float32).astype(cdt).astype(jnp.float32))
    s = Wq.sum(axis=-1, keepdims=True)
    s = np.where(np.abs(s) < 1e-6, 1.0, s)
    return (W / s).astype(np.float32)


def _round_up(x: int, m: int) -> int:
    return ((x + m - 1) // m) * m


# ----------------------------- Pallas kernel --------------------------------
def _make_fit_kernel(skip_w, add_border, pad_val, top, left, out_h, out_w,
                     TH, cdt):
    """All shapes/flags are compile-time constants closed over by the kernel."""
    cdt = jnp.dtype(cdt)

    def kernel(*refs):
        it = iter(refs)
        x_ref = next(it)                             # (1, in_h_pad, in_w_eff)  cdt
        wy_ref = next(it)                            # (TH, in_h_pad)           cdt
        wxt_ref = None if skip_w else next(it)       # (in_w, final_w_pad)      cdt
        o_ref = next(it)                             # (1, TH, final_w_pad)     f32
        t_scr = next(it)                             # (in_h_pad, final_w_pad)  f32

        r = pl.program_id(1)

        # ---- width resample for this channel: computed once, on row-tile 0 -
        @pl.when(r == 0)
        def _():
            if skip_w:
                t_scr[...] = x_ref[0].astype(jnp.float32)
            else:
                t_scr[...] = jnp.dot(x_ref[0], wxt_ref[...],
                                     preferred_element_type=jnp.float32)

        # NOTE: in the bf16 path this re-quantizes the width-resample result
        # before the height matmul (second quantization of the data).  Use
        # compute_dtype=jnp.float32 for the exact path.
        t = t_scr[...] if cdt == jnp.dtype(jnp.float32) else t_scr[...].astype(cdt)

        # ---- height resample for one output row tile ------------------------
        res = jnp.dot(wy_ref[...], t,
                      preferred_element_type=jnp.float32)        # (TH, final_w_pad)

        # ---- border fill for a nonzero pad value -----------------------------
        if add_border:
            row0 = r * TH
            rows = row0 + jax.lax.broadcasted_iota(jnp.int32, res.shape, 0)
            cols = jax.lax.broadcasted_iota(jnp.int32, res.shape, 1)
            inside = ((rows >= top) & (rows < top + out_h) &
                      (cols >= left) & (cols < left + out_w))
            res = jnp.where(inside, res, pad_val)

        o_ref[0] = res.astype(o_ref.dtype)           # lane-dense full-tile store

    return kernel


# ----------------------------- wrapper ---------------------------------------
def fit_forward(img, bounds, *, grow=True, pad=None, compute_dtype=jnp.bfloat16):
    """Pallas equivalent of Fit.forward. img: (C, H, W) float32 array."""
    img = jnp.asarray(img, jnp.float32)
    C, h, w = img.shape
    bw, bh = (bounds, bounds) if isinstance(bounds, int) else bounds

    # --- host-side scale / placement logic (mirrors the PyTorch module; we
    #     keep Python round() because the reference module uses it too) ------
    s = min(bw / w, bh / h)
    if not grow:
        s = min(s, 1.0)
    out_h, out_w = (round(h * s), round(w * s)) if s != 1 else (h, w)

    if pad is None:
        final_h, final_w = out_h, out_w
        top = left = 0
        pad_val = 0.0
    else:
        final_h, final_w = bh, bw
        top, left = (bh - out_h) // 2, (bw - out_w) // 2   # TF.pad placement
        pad_val = float(pad)

    # identity axes
    skip_h = (out_h == h) and (top == 0) and (final_h == h)
    skip_w = (out_w == w) and (left == 0) and (final_w == w)
    if skip_h and skip_w:
        return img                                   # pass-through

    add_border = (pad is not None) and (pad_val != 0.0)
    cdt = jnp.dtype(compute_dtype)
    isz = cdt.itemsize

    # --- alignment: sublane-pad h; lane-pad final_w to a multiple of 128 ----
    sub = 16 if isz < 4 else 8
    in_h_pad = _round_up(h, sub)
    final_w_pad = _round_up(final_w, 128)

    # --- output row tiling ----------------------------------------------------
    TH = 128 if final_h > 128 else _round_up(final_h, sub)
    n_rt = -(-final_h // TH)
    final_h_pad = TH * n_rt

    # --- pad-folded weight matrices ------------------------------------------
    wy_np = np.zeros((final_h_pad, in_h_pad), np.float32)
    wy_np[top:top + out_h, :h] = _prep_weights(_resize_weights(h, out_h), cdt)
    wxt_np = None
    if not skip_w:
        wxt_np = np.zeros((w, final_w_pad), np.float32)
        wxt_np[:, left:left + out_w] = _prep_weights(_resize_weights(w, out_w), cdt).T

    # --- padded, channel-kept image (zero rows/cols contribute nothing) -----
    in_w_eff = final_w_pad if skip_w else w
    x = jnp.pad(img, ((0, 0), (0, in_h_pad - h), (0, in_w_eff - w))).astype(cdt)

    args = [x, jnp.asarray(wy_np, cdt)]
    in_specs = [
        pl.BlockSpec((1, in_h_pad, in_w_eff), lambda c, r: (c, 0, 0)),
        pl.BlockSpec((TH, in_h_pad), lambda c, r: (r, 0)),
    ]
    if not skip_w:
        args.append(jnp.asarray(wxt_np, cdt))
        in_specs.append(pl.BlockSpec((w, final_w_pad), lambda c, r: (0, 0)))
    out_specs = pl.BlockSpec((1, TH, final_w_pad), lambda c, r: (c, r, 0))

    kernel = _make_fit_kernel(skip_w, add_border, pad_val, top, left,
                              out_h, out_w, TH, cdt)

    # --- VMEM budget from the per-step working set, clamped to the chip -----
    x_blk = in_h_pad * in_w_eff * isz
    wy_blk = TH * in_h_pad * isz
    wxt_blk = 0 if skip_w else w * final_w_pad * isz
    out_blk = TH * final_w_pad * 4
    scr = in_h_pad * final_w_pad * 4
    needed = 2 * (x_blk + wy_blk + wxt_blk + out_blk) + scr     # 2x = double buffers
    try:
        cap = int(pltpu.get_tpu_info().vmem_capacity_bytes)
    except Exception:
        cap = 64 << 20                                          # conservative (v7x)
    vmem_limit = int(max(min(needed + (8 << 20), cap - (8 << 20)), 16 << 20))

    flops = 2 * C * ((0 if skip_w else in_h_pad * w * final_w_pad)
                     + final_h_pad * in_h_pad * final_w_pad)
    bytes_accessed = (x.size * isz + wy_np.size * isz
                      + (0 if skip_w else wxt_np.size * isz)
                      + C * final_h_pad * final_w_pad * 4)

    out = pl.pallas_call(
        kernel,
        out_shape=jax.ShapeDtypeStruct((C, final_h_pad, final_w_pad), jnp.float32),
        grid_spec=pltpu.PrefetchScalarGridSpec(
            num_scalar_prefetch=0,
            grid=(C, n_rt),
            in_specs=in_specs,
            out_specs=out_specs,
            scratch_shapes=[pltpu.VMEM((in_h_pad, final_w_pad), jnp.float32)]),
        compiler_params=pltpu.CompilerParams(
            dimension_semantics=("parallel", "arbitrary"),
            vmem_limit_bytes=vmem_limit),
        cost_estimate=pl.CostEstimate(flops=int(flops), transcendentals=0,
                                      bytes_accessed=int(bytes_accessed)),
    )(*args)
    return out[:, :final_h, :final_w]


# ----------------------------- numpy reference -------------------------------
def fit_reference(img, bounds, *, grow=True, pad=None):
    img = np.asarray(img, np.float32)
    C, h, w = img.shape
    bw, bh = (bounds, bounds) if isinstance(bounds, int) else bounds
    s = min(bw / w, bh / h)
    if not grow:
        s = min(s, 1.0)
    oh, ow = (round(h * s), round(w * s)) if s != 1 else (h, w)
    Wy = _resize_weights(h, oh)
    Wx = _resize_weights(w, ow)
    res = np.einsum("oh,chw,pw->cop", Wy, img, Wx)
    if pad is None:
        return res.astype(np.float32)
    ph, pw_ = bh - oh, bw - ow
    out = np.full((C, bh, bw), float(pad), np.float32)
    out[:, ph // 2: ph // 2 + oh, pw_ // 2: pw_ // 2 + ow] = res
    return out


# ----------------------------- demo / check ---------------------------------
if __name__ == "__main__":
    k1, k2 = jax.random.split(jax.random.PRNGKey(0))
    C, H, W = 4, 12, 20                   # "image" of width 20, height 12
    bounds = (16, 16)                     # (bw, bh)
    img = jax.random.uniform(k1, (C, H, W), dtype=jnp.float32)
    img_np = np.asarray(img)

    # 1) default bf16-MXU path (f32 accumulation): downscale + zero pad
    out = jax.block_until_ready(fit_forward(img, bounds, grow=True, pad=0.0))
    ref = fit_reference(img_np, bounds, grow=True, pad=0.0)
    assert out.shape == (C, 16, 16), out.shape
    np.testing.assert_allclose(np.asarray(out), ref, rtol=3e-2, atol=3e-2)

    # 2) exact-f32 path, same problem, tight tolerance
    out32 = jax.block_until_ready(
        fit_forward(img, bounds, grow=True, pad=0.0, compute_dtype=jnp.float32))
    np.testing.assert_allclose(np.asarray(out32), ref, rtol=1e-5, atol=1e-5)

    # 3) nonzero pad value + identity width axis (skip_w path), grow=False
    img2 = jax.random.uniform(k2, (3, 12, 16), dtype=jnp.float32)
    out2 = jax.block_until_ready(
        fit_forward(img2, bounds, grow=False, pad=0.5, compute_dtype=jnp.float32))
    ref2 = fit_reference(np.asarray(img2), bounds, grow=False, pad=0.5)
    np.testing.assert_allclose(np.asarray(out2), ref2, rtol=1e-5, atol=1e-5)

    # 4) pad=None (resize only)
    out3 = jax.block_until_ready(
        fit_forward(img, bounds, grow=True, pad=None, compute_dtype=jnp.float32))
    ref3 = fit_reference(img_np, bounds, grow=True, pad=None)
    assert out3.shape == ref3.shape, (out3.shape, ref3.shape)
    np.testing.assert_allclose(np.asarray(out3), ref3, rtol=1e-5, atol=1e-5)

    print("KERNEL_OK")
</pallas_src>

<mosaic_0001>
module attributes {stable_mosaic.version = 11 : i64} {
  func.func @kernel(%arg0: i32, %arg1: i32, %arg2: memref<1x16x20xbf16, #tpu.memory_space<vmem>>, %arg3: memref<16x16xbf16, #tpu.memory_space<vmem>>, %arg4: memref<20x128xbf16, #tpu.memory_space<vmem>>, %arg5: memref<1x16x128xf32, #tpu.memory_space<vmem>>, %arg6: memref<16x128xf32, #tpu.memory_space<vmem>>) attributes {dimension_semantics = [#tpu.dimension_semantics<parallel>, #tpu.dimension_semantics<arbitrary>], iteration_bounds = array<i64: 4, 1>, scalar_prefetch = 0 : i64, scratch_operands = 1 : i64, tpu.core_type = #tpu.core_type<tc>, window_params = [{transform_indices = @transform_0, window_bounds = array<i64: 1, 16, 20>}, {transform_indices = @transform_1, window_bounds = array<i64: 16, 16>}, {pipeline_mode = #tpu.pipeline_mode<synchronous>, transform_indices = @transform_2, window_bounds = array<i64: 20, 128>}, {transform_indices = @transform_3, window_bounds = array<i64: 1, 16, 128>}]} {
    %c0_i32 = arith.constant 0 : i32
    %0 = arith.cmpi eq, %arg1, %c0_i32 : i32
    %1 = arith.extui %0 : i1 to i32
    %c0_i32_0 = arith.constant 0 : i32
    %2 = arith.cmpi ne, %1, %c0_i32_0 : i32
    scf.if %2 {
      %c0_7 = arith.constant 0 : index
      %c0_8 = arith.constant 0 : index
      %c0_9 = arith.constant 0 : index
      %10 = vector.load %arg2[%c0_7, %c0_8, %c0_9] : memref<1x16x20xbf16, #tpu.memory_space<vmem>>, vector<1x16x20xbf16>
      %11 = vector.shape_cast %10 : vector<1x16x20xbf16> to vector<16x20xbf16>
      %c0_10 = arith.constant 0 : index
      %c0_11 = arith.constant 0 : index
      %12 = vector.load %arg4[%c0_10, %c0_11] : memref<20x128xbf16, #tpu.memory_space<vmem>>, vector<20x128xbf16>
      %cst_12 = arith.constant dense<0.000000e+00> : vector<16x128xf32>
      %13 = tpu.matmul %11, %12, %cst_12 {dimension_numbers = #tpu.dot_dimension_numbers<[1], [0], [0], [1], [0, 0, 1, 1], [], []>} : vector<16x20xbf16>, vector<20x128xbf16>, vector<16x128xf32> -> vector<16x128xf32>
      %c0_13 = arith.constant 0 : index
      %c0_14 = arith.constant 0 : index
      %14 = vector.load %arg6[%c0_13, %c0_14] : memref<16x128xf32, #tpu.memory_space<vmem>>, vector<16x128xf32>
      tpu.vector_store %arg6[%c0_13, %c0_14], %13 {strides = array<i32>} : memref<16x128xf32, #tpu.memory_space<vmem>>, vector<16x128xf32>,
    } else {
    }
    %c0 = arith.constant 0 : index
    %c0_1 = arith.constant 0 : index
    %3 = vector.load %arg6[%c0, %c0_1] : memref<16x128xf32, #tpu.memory_space<vmem>>, vector<16x128xf32>
    %4 = arith.truncf %3 : vector<16x128xf32> to vector<16x128xbf16>
    %c0_2 = arith.constant 0 : index
    %c0_3 = arith.constant 0 : index
    %5 = vector.load %arg3[%c0_2, %c0_3] : memref<16x16xbf16, #tpu.memory_space<vmem>>, vector<16x16xbf16>
    %cst = arith.constant dense<0.000000e+00> : vector<16x128xf32>
    %6 = tpu.matmul %5, %4, %cst {dimension_numbers = #tpu.dot_dimension_numbers<[1], [0], [0], [1], [0, 0, 1, 1], [], []>} : vector<16x16xbf16>, vector<16x128xbf16>, vector<16x128xf32> -> vector<16x128xf32>
    %c0_4 = arith.constant 0 : index
    %c0_5 = arith.constant 0 : index
    %c0_6 = arith.constant 0 : index
    %7 = vector.load %arg5[%c0_4, %c0_5, %c0_6] : memref<1x16x128xf32, #tpu.memory_space<vmem>>, vector<1x16x128xf32>
    %8 = vector.shape_cast %7 : vector<1x16x128xf32> to vector<16x128xf32>
    %9 = vector.shape_cast %6 : vector<16x128xf32> to vector<1x16x128xf32>
    tpu.vector_store %arg5[%c0_4, %c0_5, %c0_6], %9 {strides = array<i32>} : memref<1x16x128xf32, #tpu.memory_space<vmem>>, vector<1x16x128xf32>,
    return
  }
  func.func @transform_0(%arg0: i32, %arg1: i32) -> (i32, i32, i32) {
    %c0_i32 = arith.constant 0 : i32
    %c0_i32_0 = arith.constant 0 : i32
    %c0_i32_1 = arith.constant 0 : i32
    return %arg0, %c0_i32, %c0_i32_0 : i32, i32, i32
  }
  func.func @transform_1(%arg0: i32, %arg1: i32) -> (i32, i32) {
    %c0_i32 = arith.constant 0 : i32
    %c0_i32_0 = arith.constant 0 : i32
    return %arg1, %c0_i32 : i32, i32
  }
  func.func @transform_2(%arg0: i32, %arg1: i32) -> (i32, i32) {
    %c0_i32 = arith.constant 0 : i32
    %c0_i32_0 = arith.constant 0 : i32
    %c0_i32_1 = arith.constant 0 : i32
    return %c0_i32, %c0_i32_0 : i32, i32
  }
  func.func @transform_3(%arg0: i32, %arg1: i32) -> (i32, i32, i32) {
    %c0_i32 = arith.constant 0 : i32
    %c0_i32_0 = arith.constant 0 : i32
    return %arg0, %arg1, %c0_i32 : i32, i32, i32
  }
}

</mosaic_0001>

<bundles_post_ra>
// kernel: tpu_custom_call.1
= control target key start
LH: loop header
LB: loop body
LE: loop exit
PB: predicated region body
PF: predicated region fallthrough
CT: control target
= control target key end

     0   :  { %8 = vsyncpa [#allocation4], 0  ;;  %s932_s0 = inlined_call_operand.hbm [shape: bf16[4,16,20], index: 0, kind: input, shape index: {}]   ;;  %s933_s1 = inlined_call_operand.hbm [shape: bf16[16,16], index: 1, kind: input, shape index: {}]   ;;  %s934_s2 = inlined_call_operand.hbm [shape: bf16[20,128], index: 2, kind: input, shape index: {}]   ;;  %s935_s3 = inlined_call_operand.hbm [shape: f32[4,16,128], index: 3, kind: output, shape index: {}]  }
   0x1   :  { %10 = vsyncpa [#allocation4 + $0x1], 0 }
   0x2   :  { %11 = vsyncpa [#allocation7], 0 }
   0x3   :  { %12 = vsyncpa [#allocation5], 0 }
   0x4   :  { %14 = vsyncpa [#allocation5 + $0x1], 0  ;;  %s778_s12 = smov 0   ;;  %s780_s13 = smov 0  }
   0x5   :  { %s782_s14 = smov 0   ;;  %s784_s15 = smov 0  }
   0x6   :  { %s786_s16 = smov 0   ;;  %s788_s17 = smov 0  }
   0x7 LB: > { %s449_s18 = sadd.s32 4294967295, %s750_s17   ;;  %s450_s19 = sadd.s32 4294967294, %s750_s17   ;;  %s750_s17 = sphi %s788_s17, %s20_s17   ;;  %s746_s16 = sphi %s786_s16, %s945_s16   ;;  %s742_s15 = sphi %s784_s15, %s944_s15   ;;  %s738_s14 = sphi %s782_s14, %s943_s14   ;;  %s734_s13 = sphi %s780_s13, %s942_s13   ;;  %s730_s12 = sphi %s778_s12, %s941_s12  }
   0x8   : > { %p52_p0 = scmp.ne.s32.totalorder %s734_s13, %s730_s12  ;;  %p814_p1 = scmp.eq.s32.totalorder %s449_s18, 0 }
   0x9   : > { %p131_p2 = scmp.eq.s32.totalorder %s450_s19, 3  ;;  %p451_p4 = scmp.ge.s32.totalorder %s750_s17, 1 }
   0xa   : > { %p820_p3 = por %p814_p1, %p52_p0  ;;  %p138_p6 = scmp.lt.s32.totalorder %s750_s17, 5 }
   0xb   : > { %p825_p5 = por %p131_p2, %p52_p0  ;;  %s152_s25 = sshll.u32 %s933_s1, 4  ;;  %s153_s25 = int_to_ptr.hbm [resolvable:$true] %s152_s25 }
   0xc   : > { %p833_p7 = pnand %p451_p4, %p138_p6  ;;  %s752_s27 = smov [#allocation6]  }
   0xd   : > { %s154_s28 = sshll.u32 %s752_s27, 4  ;;  %s166_s4 = sshll.u32 %s934_s2, 4  ;;  %s155_s28 = int_to_ptr.vmem [resolvable:$true] %s154_s28  ;;  %s167_s4 = int_to_ptr.hbm [resolvable:$true] %s166_s4 }
   0xe   : > { %p499_p8 = pneg %p833_p7  ;;  %s753_s5 = smov 64  }
   0xf   : > { %s754_s6 = smov 4   ;;  %s755_s7 = smov [#allocation8]  }
  0x10   : > { %p500_p9 = pnand %p499_p8, %p814_p1  ;;  %s168_s8 = sshll.u32 %s755_s7, 4  ;;  %s169_s8 = int_to_ptr.vmem [resolvable:$true] %s168_s8 }
  0x11   : > { %p125_p10 = scmp.eq.s32.totalorder %s449_s18, 3  ;;  %s32_s9 = sadd.s32 1, %s746_s16 }
  0x12   : > { %502 = dma.hbm_to_vmem [thread:$0]  (!%p500_p9), %s153_s25, 128, %s155_s28, [#allocation7], %s753_s5, %s753_s5, %s754_s6  }
  0x13   : > { %505 = dma.hbm_to_vmem [thread:$0]  (!%p500_p9), %s167_s4, 192, %s169_s8, [#allocation7], %s753_s5, %s753_s5, %s754_s6  }
  0x14   : > { %p34_p11 = scmp.ge.s32.totalorder %s32_s9, 4  ;;  %s39_s10 = sadd.s32 1, %s738_s14 }
  0x15   : > { %p46_p12 = scmp.ne.s32.totalorder %s738_s14, %s734_s13  ;;  %p47_p13 = scmp.eq.s32.totalorder %s750_s17, 0 }
  0x16   : > { %s947_s9 = smov (%p34_p11, %s32_s9), 0  ;;  %p516_p2 = scmp.lt.s32.totalorder %s750_s17, 4 }
  0x17   : > { %p859_p0 = por %p125_p10, %p46_p12  ;;  %s36_s19 = ssub.s32 %s746_s16, %s947_s9 }
  0x18   : > { %s182_s23 = sand.u32 1, %s738_s14   ;;  %p37_p4 = scmp.eq.s32.totalorder %s36_s19, 0 }
  0x19   : > { %p48_p6 = por %p47_p13, %p46_p12  ;;  %s455_s24 = sshll.u32 %s182_s23, 3 }
  0x1a   : > { %s482_s18 = sshll.u32 %s746_s16, 3  ;;  %s186_s4 = scalar_lea.vmem [#allocation3], %s455_s24 }
  0x1b   : > { %s869_s25 = scalar_select %p37_p4, %s738_s14, %s39_s10  }
  0x1c   : > { %s191_s29 = scalar_lea.hbm %s932_s0, %s482_s18  ;;  %s194_s7 = sshll.u32 %s186_s4, 4  ;;  %s195_s7 = int_to_ptr.vmem [resolvable:$true] %s194_s7 }
  0x1d   : > { %s192_s30 = sshll.u32 %s191_s29, 4  ;;  %p507_p8 = pnand %p516_p2, %p48_p6  ;;  %s193_s30 = int_to_ptr.hbm [resolvable:$true] %s192_s30 }
  0x1e   : > { %s183_s8 = scalar_lea.sflag [#allocation4], %s182_s23  ;;  %206 = sbr.rel (%p833_p7) target bundleno = 328 (0x148), region = 32 }
  0x1f   : > { %509 = dma.hbm_to_vmem [thread:$0]  (!%p507_p8), %s193_s30, 128, %s195_s7, %s183_s8, %s753_s5, %s753_s5, %s754_s6  }
  0x20   : > { %s882_s10 = sand.u32 (!%p833_p7), 1, %s734_s13  }
  0x21   : > { %s459_s19 = sshll.u32 (!%p833_p7), %s882_s10, 3  ;;  %s209_s24 = scalar_lea.sflag (!%p833_p7), [#allocation4], %s882_s10 }
  0x22   : > { %s212_s18 = scalar_lea.vmem (!%p833_p7), [#allocation3], %s459_s19 }
  0x23   : > { %717 = dma.done.wait (%p820_p3), %s209_s24, 128  }
  0x24   : > { %719 = vsyncadd (%p820_p3), %s209_s24, 4294967168 }
  0x25   : > { %721 = dma.done.wait (%p814_p1), [#allocation7], 320  }
  0x26   : > { %723 = vsyncadd (%p814_p1), [#allocation7], 4294966976  ;;  %v257_v0 = vld [vmem:[#allocation8 + $0x8] sm:$0x3]  ;;  %vm276_vm0 = vcmask 1041408   ;;  %v484_v4 = vld [vmem:[#allocation8] sm:$0xff] }
  0x27   : > { %v268_v1 = vunpack.c.l.b16 %v257_v0  ;;  %v483_v5 = vld [vmem:[%s212_s18] sm:$0xff]  ;;  %vm272_vm1 = vcmask 162816   ;;  %v485_v9 = vld [vmem:[#allocation6] sm:$0xff]  ;;  %vm306_vm2 = vcmask 130048   ;;  %s462_s20 = sshll.u32 %s882_s10, 4  ;;  %s486_s21 = sshll.u32 %s742_s15, 4 }
  0x28   : > { %s340_s6 = scalar_lea.hbm %s935_s3, %s486_s21  ;;  %s245_s23 = scalar_lea.vmem [#allocation9], %s462_s20 }
  0x29   : > { %v270_v2 = vpack.c.b16 %v268_v1, %v268_v1  ;;  %s341_s27 = sshll.u32 %s245_s23, 4  ;;  %s343_s28 = sshll.u32 %s340_s6, 4  ;;  %s342_s27 = int_to_ptr.vmem [resolvable:$true] %s341_s27  ;;  %s344_s28 = int_to_ptr.hbm [resolvable:$true] %s343_s28 }
  0x2a   : > { %s327_s29 = scalar_lea.sflag [#allocation5], %s882_s10  ;;  %s678_s30 = sshra.s32 %s344_s28, 4  ;;  %s679_s30 = int_to_ptr.hbm [resolvable:$true] %s678_s30 }
  0x2b   : > { %v278_v3 = vsel %vm276_vm0, %v270_v2, 0  ;;  %s680_s4 = scalar_lea.hbm %s679_s30, 16  ;;  %s684_s8 = scalar_lea.hbm %s935_s3, 64 }
  0x2c   : > { %286 = vmatpush.bf16.msra.mxu0 %v278_v3  ;;  %p681_p1 = scmp.ne.s32.totalorder %s679_s30, %s680_s4  ;;  %p685_p9 = scmp.lt.s32.totalorder %s679_s30, %s935_s3 }
  0x2d   : > { %p686_p10 = scmp.lt.s32.totalorder %s684_s8, %s680_s4 }
  0x2e   : > { %p682_p3 = pnand %p681_p1, %p859_p0 }
  0x2f   : > { %p687_p11 = por %p686_p10, %p685_p9 }
  0x30   : > { %287 = vmatpush.bf16.msra.mxu0 %v484_v4  ;;  %p683_p7 = pneg %p682_p3 }
  0x32   : > { %p688_p12 = pnand %p687_p11, %p683_p7 }
  0x33   : > { %471 = vmatmul.msk.bf16.vlgmr.msra.gmra.mxu0 %vm272_vm1, %v483_v5 }
  0xb0   : > { %v289_v6 = vpop.f32.mrf.mxu0 }
  0xb8   : > { %v291_v7 = vpop.f32.mrf.mxu0 }
  0xb9   : > { %v298_v8 = vpack.c.bf16 %v291_v7, %v289_v6 }
  0xbb   : > { %317 = vmatpush.bf16.msra.mxu1 %v298_v8 }
  0xbe   : > { %476 = vmatmul.msk.bf16.vlgmr.msra.gmra.mxu1 %vm306_vm2, %v485_v9 }
 0x13b   : > { %v319_v10 = vpop.f32.mrf.mxu1 }
 0x13c   : > { %324 = vst [vmem:[%s245_s23] sm:$0xff] %v319_v10 }
 0x143   : > { %v321_v11 = vpop.f32.mrf.mxu1 }
 0x144   : > { %325 = vst [vmem:[%s245_s23 + $0x8] sm:$0xff] %v321_v11 }
 0x145   : > { %691 = shalt.err (!%p688_p12)
}
 0x146   : > { %s756_s10 = smov 128   ;;  %s757_s18 = smov 8  }
 0x147   : > { %497 = dma.vmem_to_hbm [thread:$0]  (%p859_p0), %s342_s27, 256, %s344_s28, %s327_s29, %s756_s10, %s756_s10, %s757_s18  }
 0x148 PF: > { %p519_p13 = scmp.ge.s32.totalorder %s750_s17, 2  ;;  %s358_s20 = sand.u32 1, %s730_s12  }
 0x149   : > { %s359_s21 = scalar_lea.sflag [#allocation5], %s358_s20 }
 0x14a   : > { %p511_p2 = pnand %p519_p13, %p825_p5 }
 0x14c   : > { %p512_p4 = pneg %p511_p2 }
 0x14e   : > { %725 = dma.done.wait (%p512_p4), %s359_s21, 256  }
 0x14f   : > { %727 = vsyncadd (%p512_p4), %s359_s21, 4294967040  ;;  %s20_s17 = sadd.s32 1, %s750_s17   ;;  %s941_s12 = smov %s734_s13 }
 0x150   : > { %p17_p6 = scmp.ge.s32.totalorder %s20_s17, 6   ;;  %s942_s13 = smov %s738_s14 }
 0x151   : > { %s943_s14 = smov %s869_s25  ;;  %s944_s15 = smov %s746_s16 }
 0x152   : > { %s945_s16 = smov %s947_s9  ;;  %19 = sbr.rel (!%p17_p6) target bundleno = 7 (0x7), region = 90 }
 0x157   :  { %365 = vsyncpa [#allocation4], 1 }
 0x158   :  { %367 = vsyncpa [#allocation4 + $0x1], 1 }
 0x159   :  { %368 = vsyncpa [#allocation7], 1 }
 0x15a   :  { %369 = vsyncpa [#allocation5], 1 }
 0x15b   :  { %371 = vsyncpa [#allocation5 + $0x1], 1 }

</bundles_post_ra>
